<compile_context>
chip_gen: v6e
topology: v6e:2x2x1
jax: 0.10.0
libtpu: 0.0.40
codegen_flags: <defaults>
</compile_context>

<pallas_src>
import functools

import jax
import jax.numpy as jnp
from jax.experimental import pallas as pl
from jax.experimental.pallas import tpu as pltpu

EPS = 1e-5      # torch.nn.BatchNorm1d default eps
LANE = 128


def _round_up(n, m):
    return ((n + m - 1) // m) * m


# ---------------------------------------------------------------------------
# Fused kernel: one-hot gather + nlayers x (linear -> ReLU -> BN) + head
# ---------------------------------------------------------------------------
def _fused_decoder_kernel(nlayers, circ_ref, drug_ref, nf_ref, *rest):
    """circ_ref / drug_ref: VMEM int32 (batch, 1) index tables.
    nf_ref: VMEM (n_pad, f_pad) bf16 node features (zero padded).

    rest = [W0_top, W0_bot, b0, g0, be0]                     (layer 0, split W)
         + [W_l, b_l, g_l, be_l for l in 1..nlayers-1]
         + [W_head, b_head]
         + [o_ref]                                           ((batch, 128) f32)
    Weights are bf16; biases / gamma / beta are f32 (1, H) rows.
    """
    n_param = 5 + 4 * (nlayers - 1) + 2
    params = rest[:n_param]
    o_ref = rest[n_param]

    batch = circ_ref.shape[0]
    n_pad = nf_ref.shape[0]

    # ---- MXU one-hot gather (replaces per-row scalar gather loop) ----------
    nf = nf_ref[...]                                       # (n_pad, f_pad) bf16
    iota = jax.lax.broadcasted_iota(jnp.int32, (batch, n_pad), 1)
    oh_c = (iota == circ_ref[...]).astype(jnp.bfloat16)    # (batch, n_pad)
    oh_d = (iota == drug_ref[...]).astype(jnp.bfloat16)
    # Exact gather of bf16 rows (f32 accumulate of {0,1}-weighted bf16 values).
    p = jnp.dot(oh_c, nf, preferred_element_type=jnp.float32).astype(jnp.bfloat16)
    d = jnp.dot(oh_d, nf, preferred_element_type=jnp.float32).astype(jnp.bfloat16)

    # ---- shared linear -> ReLU -> BatchNorm1d (batch statistics, f32) ------
    # TODO(synk): F.dropout (training-mode RNG dropout) treated as identity
    # (inference semantics); BN uses batch statistics (train-mode), running
    # stats are not tracked in-kernel.
    def relu_bn(y, b, g, be):
        y = jnp.maximum(y + b, 0.0)                        # bias + ReLU (f32)
        mean = jnp.mean(y, axis=0, keepdims=True)          # (1, H)
        yc = y - mean
        var = jnp.mean(yc * yc, axis=0, keepdims=True)     # two-pass variance
        inv = jax.lax.rsqrt(var + EPS)
        return g * yc * inv + be

    # ---- layer 0: split-weight matmul, no padded concat ---------------------
    w_top, w_bot, b0, g0, be0 = params[0:5]
    y = (jnp.dot(p, w_top[...], preferred_element_type=jnp.float32)
         + jnp.dot(d, w_bot[...], preferred_element_type=jnp.float32))
    x = relu_bn(y, b0[...], g0[...], be0[...])

    # ---- remaining layers ---------------------------------------------------
    idx = 5
    for _ in range(1, nlayers):
        w_ref, b_ref, g_ref, be_ref = params[idx:idx + 4]
        idx += 4
        y = jnp.dot(x.astype(jnp.bfloat16), w_ref[...],
                    preferred_element_type=jnp.float32)
        x = relu_bn(y, b_ref[...], g_ref[...], be_ref[...])

    # ---- head: linear -> sigmoid, lane-dense (batch, 128) output slab -------
    wh_ref, bh_ref = params[idx], params[idx + 1]
    logits = jnp.dot(x.astype(jnp.bfloat16), wh_ref[...],
                     preferred_element_type=jnp.float32)
    o_ref[...] = jax.nn.sigmoid(logits + bh_ref[...]).astype(o_ref.dtype)


def fused_decoder_forward(circ_idx2d, drug_idx2d, nf_pad, flat_params, *,
                          nlayers, batch, out_pad, cost_estimate):
    kernel = functools.partial(_fused_decoder_kernel, nlayers)
    n_inputs = 3 + len(flat_params)

    # Explicit VMEM budget: v5e's default scoped limit (16 MiB) is the tightest;
    # v7x has only 64 MiB physical per TC, so clamp well below that.
    total_bytes = (sum(int(p.size) * p.dtype.itemsize for p in flat_params)
                   + int(nf_pad.size) * nf_pad.dtype.itemsize
                   + 2 * batch * 4
                   + batch * out_pad * 4)
    vmem_limit = int(min(max(4 * total_bytes + (8 << 20), 16 << 20), 48 << 20))

    return pl.pallas_call(
        kernel,
        out_shape=jax.ShapeDtypeStruct((batch, out_pad), jnp.float32),
        in_specs=[pl.BlockSpec(memory_space=pltpu.MemorySpace.VMEM)] * n_inputs,
        out_specs=pl.BlockSpec(memory_space=pltpu.MemorySpace.VMEM),
        compiler_params=pltpu.CompilerParams(vmem_limit_bytes=vmem_limit),
        cost_estimate=cost_estimate,
    )(circ_idx2d, drug_idx2d, nf_pad, *flat_params)


# ---------------------------------------------------------------------------
# Module wrapper (parameter container + forward glue)
# ---------------------------------------------------------------------------
class DTIDecoderPallas:
    """JAX/Pallas port of DTI_Decoder.

    The PyTorch module hard-codes `drug_index - 271` (271 = number of circRNA
    nodes).  For small synthetic shapes we parameterise that offset.
    """

    def __init__(self, key, protein_num, drug_num, nodefeat_size, nhidden,
                 nlayers, dropout=0.3, circ_offset=271):
        assert nodefeat_size % 2 == 0
        self.nlayers = nlayers
        self.dropout = dropout
        self.circ_offset = circ_offset
        self.feat_dim = nodefeat_size // 2          # per-node feature width
        self.f_pad = _round_up(self.feat_dim, LANE)

        keys = jax.random.split(key, 2 * nlayers + 6)
        ki = iter(keys)

        # -------- un-padded (reference) parameters, f32 ---------------------
        self.Ws, self.bs, self.gammas, self.betas = [], [], [], []
        in_dim = nodefeat_size
        for l in range(nlayers):
            out_dim = nhidden[l]
            self.Ws.append(0.1 * jax.random.normal(next(ki), (in_dim, out_dim),
                                                   jnp.float32))
            self.bs.append(0.1 * jax.random.normal(next(ki), (out_dim,),
                                                   jnp.float32))
            self.gammas.append(jnp.ones((out_dim,), jnp.float32))
            self.betas.append(jnp.zeros((out_dim,), jnp.float32))
            in_dim = out_dim
        self.W_head = 0.1 * jax.random.normal(next(ki), (nhidden[-1], 1),
                                              jnp.float32)
        self.b_head = 0.1 * jax.random.normal(next(ki), (1,), jnp.float32)

        # Parameters present in __init__ but unused in forward (parity only).
        self.w_drug = jnp.ones((2,), jnp.float32)
        self.w_rna = jnp.ones((2,), jnp.float32)
        self.drug_linear1_w = 0.01 * jax.random.normal(next(ki), (2048, 1024),
                                                       jnp.float32)
        self.drug_linear2_w = 0.01 * jax.random.normal(next(ki), (1024, 128),
                                                       jnp.float32)

        # -------- padded, lane-dense kernel parameters ----------------------
        # Weights in bf16 (MXU-native, half the DMA); bias/gamma/beta in f32.
        # Padded hidden lanes rely on gamma=0 / beta=0 zeroing them after BN.
        self.h_pad = [_round_up(h, LANE) for h in nhidden]
        self.out_pad = LANE
        f, fp = self.feat_dim, self.f_pad
        flat = []
        for l in range(nlayers):
            h, hp = nhidden[l], self.h_pad[l]
            b = jnp.zeros((1, hp), jnp.float32).at[0, :h].set(self.bs[l])
            g = jnp.zeros((1, hp), jnp.float32).at[0, :h].set(self.gammas[l])
            be = jnp.zeros((1, hp), jnp.float32).at[0, :h].set(self.betas[l])
            if l == 0:
                # Split layer-0 weight: protein half / drug half, no concat pad.
                w_top = jnp.zeros((fp, hp), jnp.float32
                                  ).at[:f, :h].set(self.Ws[0][:f])
                w_bot = jnp.zeros((fp, hp), jnp.float32
                                  ).at[:f, :h].set(self.Ws[0][f:2 * f])
                flat += [w_top.astype(jnp.bfloat16),
                         w_bot.astype(jnp.bfloat16), b, g, be]
            else:
                ip = self.h_pad[l - 1]
                w = jnp.zeros((ip, hp), jnp.float32
                              ).at[:nhidden[l - 1], :h].set(self.Ws[l])
                flat += [w.astype(jnp.bfloat16), b, g, be]
        wh = jnp.zeros((self.h_pad[-1], self.out_pad), jnp.float32
                       ).at[:nhidden[-1], :1].set(self.W_head)
        bh = jnp.zeros((1, self.out_pad), jnp.float32).at[0, :1].set(
            self.b_head)
        flat += [wh.astype(jnp.bfloat16), bh]
        self.flat_params = flat

    def _pad_nodes(self, nodes_features):
        # TODO(synk): for very large node tables (v7x: 64 MiB VMEM) keep the
        # table in HBM (memory_space=pl.ANY) and DMA-gather only batch rows.
        n, f = nodes_features.shape
        n_pad = _round_up(n, LANE)   # lane-dense contraction dim for one-hot
        nf = jnp.zeros((n_pad, self.f_pad), jnp.bfloat16)
        return nf.at[:n, :f].set(nodes_features.astype(jnp.bfloat16))

    def _cost_estimate(self, batch, n_pad):
        hp = self.h_pad
        flops = 2 * batch * (2 * n_pad * self.f_pad           # one-hot gathers
                             + 2 * self.f_pad * hp[0]          # split layer 0
                             + sum(hp[l - 1] * hp[l]
                                   for l in range(1, self.nlayers))
                             + hp[-1] * self.out_pad)
        transcendentals = batch * (self.out_pad + sum(hp))
        bytes_accessed = (sum(int(p.size) * p.dtype.itemsize
                              for p in self.flat_params)
                          + n_pad * self.f_pad * 2
                          + 2 * batch * 4 + batch * self.out_pad * 4)
        return pl.CostEstimate(flops=int(flops),
                               transcendentals=int(transcendentals),
                               bytes_accessed=int(bytes_accessed))

    def __call__(self, epoch, CircRNAs, Rna_3, Drugs, Drugs_3, nodes_features,
                 circRNA_index, drug_index):
        # Parity-only computations from the PyTorch forward (results unused).
        protein_features_ori = CircRNAs[circRNA_index]
        col_cdi_id = drug_index - self.circ_offset
        drug_features_ori = Drugs[col_cdi_id]
        del protein_features_ori, drug_features_ori, Rna_3, Drugs_3, epoch

        nf_pad = self._pad_nodes(nodes_features)
        batch = circRNA_index.shape[0]
        circ2d = circRNA_index.astype(jnp.int32).reshape(batch, 1)
        drug2d = drug_index.astype(jnp.int32).reshape(batch, 1)
        # TODO(synk): for large batches add a batch grid axis (parallel on
        # v7x's 2 TCs) with a two-pass BN; monolithic batch fits VMEM here.
        out = fused_decoder_forward(
            circ2d, drug2d, nf_pad, self.flat_params,
            nlayers=self.nlayers, batch=batch, out_pad=self.out_pad,
            cost_estimate=self._cost_estimate(batch, nf_pad.shape[0]))
        return out[:, :1]        # drop lane padding of the head output


# ---------------------------------------------------------------------------
# Reference (pure JAX) mirroring the kernel's bf16 weight/activation rounding
# ---------------------------------------------------------------------------
def reference_forward(dec, nodes_features, circRNA_index, drug_index):
    bf = jnp.bfloat16
    nf = nodes_features.astype(bf)
    p = nf[circRNA_index]
    d = nf[drug_index]
    x = jnp.concatenate([p, d], axis=1)                       # bf16
    for l in range(dec.nlayers):
        y = jnp.dot(x, dec.Ws[l].astype(bf),
                    preferred_element_type=jnp.float32) + dec.bs[l]
        y = jnp.maximum(y, 0.0)
        mean = jnp.mean(y, axis=0, keepdims=True)
        var = jnp.mean(jnp.square(y - mean), axis=0, keepdims=True)
        x = (dec.gammas[l] * (y - mean) / jnp.sqrt(var + EPS)
             + dec.betas[l]).astype(bf)
    logits = jnp.dot(x, dec.W_head.astype(bf),
                     preferred_element_type=jnp.float32) + dec.b_head
    return jax.nn.sigmoid(logits)


# ---------------------------------------------------------------------------
if __name__ == "__main__":
    key = jax.random.PRNGKey(0)
    k_nodes, k_circ, k_drug, k_params = jax.random.split(key, 4)

    # Small synthetic shapes:
    num_circ = 16          # circRNA node ids: 0..15
    num_drug = 8           # drug node ids:    16..23
    feat_dim = 32          # per-node feature dim
    nodefeat_size = 2 * feat_dim   # after concat of (protein, drug) features
    nhidden = [64, 32]
    nlayers = 2
    batch = 8              # number of (circRNA, drug) pairs

    nodes_features = jax.random.normal(
        k_nodes, (num_circ + num_drug, feat_dim), jnp.float32)
    CircRNAs = jax.random.normal(k_circ, (num_circ, feat_dim), jnp.float32)
    Drugs = jax.random.normal(k_drug, (num_drug, 16), jnp.float32)
    Rna_3 = jnp.zeros((num_circ, 4), jnp.float32)    # unused by forward
    Drugs_3 = jnp.zeros((num_drug, 4), jnp.float32)  # unused by forward

    circRNA_index = jnp.array([0, 3, 5, 7, 9, 11, 13, 15], jnp.int32)
    drug_index = jnp.array([16, 17, 18, 19, 20, 21, 22, 23], jnp.int32)

    decoder = DTIDecoderPallas(k_params, num_circ, num_drug, nodefeat_size,
                               nhidden, nlayers, dropout=0.3,
                               circ_offset=num_circ)

    out = decoder(0, CircRNAs, Rna_3, Drugs, Drugs_3, nodes_features,
                  circRNA_index, drug_index)
    out = jax.block_until_ready(out)

    ref = reference_forward(decoder, nodes_features, circRNA_index, drug_index)
    assert out.shape == (batch, 1), out.shape
    # Reference uses identically bf16-rounded weights/activations; remaining
    # differences are f32 accumulation-order only.
    assert jnp.allclose(out, ref, atol=1e-3, rtol=1e-3), (out, ref)

    print("KERNEL_OK")
</pallas_src>

<mosaic_0001>
module attributes {stable_mosaic.version = 11 : i64} {
  func.func @_fused_decoder_kernel(%arg0: memref<8x1xi32, #tpu.memory_space<vmem>>, %arg1: memref<8x1xi32, #tpu.memory_space<vmem>>, %arg2: memref<128x128xbf16, #tpu.memory_space<vmem>>, %arg3: memref<128x128xbf16, #tpu.memory_space<vmem>>, %arg4: memref<128x128xbf16, #tpu.memory_space<vmem>>, %arg5: memref<1x128xf32, #tpu.memory_space<vmem>>, %arg6: memref<1x128xf32, #tpu.memory_space<vmem>>, %arg7: memref<1x128xf32, #tpu.memory_space<vmem>>, %arg8: memref<128x128xbf16, #tpu.memory_space<vmem>>, %arg9: memref<1x128xf32, #tpu.memory_space<vmem>>, %arg10: memref<1x128xf32, #tpu.memory_space<vmem>>, %arg11: memref<1x128xf32, #tpu.memory_space<vmem>>, %arg12: memref<128x128xbf16, #tpu.memory_space<vmem>>, %arg13: memref<1x128xf32, #tpu.memory_space<vmem>>, %arg14: memref<8x128xf32, #tpu.memory_space<vmem>>) attributes {dimension_semantics = [], scalar_prefetch = 0 : i64, scratch_operands = 0 : i64, tpu.core_type = #tpu.core_type<tc>} {
    %c0 = arith.constant 0 : index
    %c0_0 = arith.constant 0 : index
    %0 = vector.load %arg2[%c0, %c0_0] : memref<128x128xbf16, #tpu.memory_space<vmem>>, vector<128x128xbf16>
    %1 = tpu.iota {dimensions = array<i32: 1>} : vector<8x128xi32>
    %c0_1 = arith.constant 0 : index
    %c0_2 = arith.constant 0 : index
    %2 = vector.load %arg0[%c0_1, %c0_2] : memref<8x1xi32, #tpu.memory_space<vmem>>, vector<8x1xi32>
    %3 = vector.broadcast %2 : vector<8x1xi32> to vector<8x128xi32>
    %4 = arith.cmpi eq, %1, %3 : vector<8x128xi32>
    %5 = arith.extui %4 : vector<8x128xi1> to vector<8x128xi32>
    %6 = arith.sitofp %5 : vector<8x128xi32> to vector<8x128xf32>
    %7 = arith.truncf %6 : vector<8x128xf32> to vector<8x128xbf16>
    %c0_3 = arith.constant 0 : index
    %c0_4 = arith.constant 0 : index
    %8 = vector.load %arg1[%c0_3, %c0_4] : memref<8x1xi32, #tpu.memory_space<vmem>>, vector<8x1xi32>
    %9 = vector.broadcast %8 : vector<8x1xi32> to vector<8x128xi32>
    %10 = arith.cmpi eq, %1, %9 : vector<8x128xi32>
    %11 = arith.extui %10 : vector<8x128xi1> to vector<8x128xi32>
    %12 = arith.sitofp %11 : vector<8x128xi32> to vector<8x128xf32>
    %13 = arith.truncf %12 : vector<8x128xf32> to vector<8x128xbf16>
    %cst = arith.constant dense<0.000000e+00> : vector<8x128xf32>
    %14 = tpu.matmul %7, %0, %cst {dimension_numbers = #tpu.dot_dimension_numbers<[1], [0], [0], [1], [0, 0, 1, 1], [], []>} : vector<8x128xbf16>, vector<128x128xbf16>, vector<8x128xf32> -> vector<8x128xf32>
    %15 = arith.truncf %14 : vector<8x128xf32> to vector<8x128xbf16>
    %cst_5 = arith.constant dense<0.000000e+00> : vector<8x128xf32>
    %16 = tpu.matmul %13, %0, %cst_5 {dimension_numbers = #tpu.dot_dimension_numbers<[1], [0], [0], [1], [0, 0, 1, 1], [], []>} : vector<8x128xbf16>, vector<128x128xbf16>, vector<8x128xf32> -> vector<8x128xf32>
    %17 = arith.truncf %16 : vector<8x128xf32> to vector<8x128xbf16>
    %c0_6 = arith.constant 0 : index
    %c0_7 = arith.constant 0 : index
    %18 = vector.load %arg3[%c0_6, %c0_7] : memref<128x128xbf16, #tpu.memory_space<vmem>>, vector<128x128xbf16>
    %cst_8 = arith.constant dense<0.000000e+00> : vector<8x128xf32>
    %19 = tpu.matmul %15, %18, %cst_8 {dimension_numbers = #tpu.dot_dimension_numbers<[1], [0], [0], [1], [0, 0, 1, 1], [], []>} : vector<8x128xbf16>, vector<128x128xbf16>, vector<8x128xf32> -> vector<8x128xf32>
    %c0_9 = arith.constant 0 : index
    %c0_10 = arith.constant 0 : index
    %20 = vector.load %arg4[%c0_9, %c0_10] : memref<128x128xbf16, #tpu.memory_space<vmem>>, vector<128x128xbf16>
    %cst_11 = arith.constant dense<0.000000e+00> : vector<8x128xf32>
    %21 = tpu.matmul %17, %20, %cst_11 {dimension_numbers = #tpu.dot_dimension_numbers<[1], [0], [0], [1], [0, 0, 1, 1], [], []>} : vector<8x128xbf16>, vector<128x128xbf16>, vector<8x128xf32> -> vector<8x128xf32>
    %22 = arith.addf %19, %21 : vector<8x128xf32>
    %c0_12 = arith.constant 0 : index
    %c0_13 = arith.constant 0 : index
    %23 = vector.load %arg5[%c0_12, %c0_13] : memref<1x128xf32, #tpu.memory_space<vmem>>, vector<1x128xf32>
    %c0_14 = arith.constant 0 : index
    %c0_15 = arith.constant 0 : index
    %24 = vector.load %arg6[%c0_14, %c0_15] : memref<1x128xf32, #tpu.memory_space<vmem>>, vector<1x128xf32>
    %c0_16 = arith.constant 0 : index
    %c0_17 = arith.constant 0 : index
    %25 = vector.load %arg7[%c0_16, %c0_17] : memref<1x128xf32, #tpu.memory_space<vmem>>, vector<1x128xf32>
    %26 = vector.broadcast %23 : vector<1x128xf32> to vector<8x128xf32>
    %27 = arith.addf %22, %26 : vector<8x128xf32>
    %cst_18 = arith.constant 0.000000e+00 : f32
    %28 = vector.broadcast %cst_18 : f32 to vector<8x128xf32>
    %29 = arith.maximumf %27, %28 : vector<8x128xf32>
    %cst_19 = arith.constant dense<0.000000e+00> : vector<128xf32>
    %30 = vector.multi_reduction <add>, %29, %cst_19 [0] : vector<8x128xf32> to vector<128xf32>
    %31 = vector.shape_cast %30 : vector<128xf32> to vector<1x128xf32>
    %cst_20 = arith.constant 8.000000e+00 : f32
    %32 = vector.broadcast %cst_20 : f32 to vector<1x128xf32>
    %33 = arith.divf %31, %32 : vector<1x128xf32>
    %34 = vector.broadcast %33 : vector<1x128xf32> to vector<8x128xf32>
    %35 = arith.subf %29, %34 : vector<8x128xf32>
    %36 = arith.mulf %35, %35 : vector<8x128xf32>
    %cst_21 = arith.constant dense<0.000000e+00> : vector<128xf32>
    %37 = vector.multi_reduction <add>, %36, %cst_21 [0] : vector<8x128xf32> to vector<128xf32>
    %38 = vector.shape_cast %37 : vector<128xf32> to vector<1x128xf32>
    %cst_22 = arith.constant 8.000000e+00 : f32
    %39 = vector.broadcast %cst_22 : f32 to vector<1x128xf32>
    %40 = arith.divf %38, %39 : vector<1x128xf32>
    %cst_23 = arith.constant 9.99999974E-6 : f32
    %41 = vector.broadcast %cst_23 : f32 to vector<1x128xf32>
    %42 = arith.addf %40, %41 : vector<1x128xf32>
    %43 = math.rsqrt %42 : vector<1x128xf32>
    %44 = vector.broadcast %24 : vector<1x128xf32> to vector<8x128xf32>
    %45 = arith.mulf %44, %35 : vector<8x128xf32>
    %46 = vector.broadcast %43 : vector<1x128xf32> to vector<8x128xf32>
    %47 = arith.mulf %45, %46 : vector<8x128xf32>
    %48 = vector.broadcast %25 : vector<1x128xf32> to vector<8x128xf32>
    %49 = arith.addf %47, %48 : vector<8x128xf32>
    %50 = arith.truncf %49 : vector<8x128xf32> to vector<8x128xbf16>
    %c0_24 = arith.constant 0 : index
    %c0_25 = arith.constant 0 : index
    %51 = vector.load %arg8[%c0_24, %c0_25] : memref<128x128xbf16, #tpu.memory_space<vmem>>, vector<128x128xbf16>
    %cst_26 = arith.constant dense<0.000000e+00> : vector<8x128xf32>
    %52 = tpu.matmul %50, %51, %cst_26 {dimension_numbers = #tpu.dot_dimension_numbers<[1], [0], [0], [1], [0, 0, 1, 1], [], []>} : vector<8x128xbf16>, vector<128x128xbf16>, vector<8x128xf32> -> vector<8x128xf32>
    %c0_27 = arith.constant 0 : index
    %c0_28 = arith.constant 0 : index
    %53 = vector.load %arg9[%c0_27, %c0_28] : memref<1x128xf32, #tpu.memory_space<vmem>>, vector<1x128xf32>
    %c0_29 = arith.constant 0 : index
    %c0_30 = arith.constant 0 : index
    %54 = vector.load %arg10[%c0_29, %c0_30] : memref<1x128xf32, #tpu.memory_space<vmem>>, vector<1x128xf32>
    %c0_31 = arith.constant 0 : index
    %c0_32 = arith.constant 0 : index
    %55 = vector.load %arg11[%c0_31, %c0_32] : memref<1x128xf32, #tpu.memory_space<vmem>>, vector<1x128xf32>
    %56 = vector.broadcast %53 : vector<1x128xf32> to vector<8x128xf32>
    %57 = arith.addf %52, %56 : vector<8x128xf32>
    %cst_33 = arith.constant 0.000000e+00 : f32
    %58 = vector.broadcast %cst_33 : f32 to vector<8x128xf32>
    %59 = arith.maximumf %57, %58 : vector<8x128xf32>
    %cst_34 = arith.constant dense<0.000000e+00> : vector<128xf32>
    %60 = vector.multi_reduction <add>, %59, %cst_34 [0] : vector<8x128xf32> to vector<128xf32>
    %61 = vector.shape_cast %60 : vector<128xf32> to vector<1x128xf32>
    %cst_35 = arith.constant 8.000000e+00 : f32
    %62 = vector.broadcast %cst_35 : f32 to vector<1x128xf32>
    %63 = arith.divf %61, %62 : vector<1x128xf32>
    %64 = vector.broadcast %63 : vector<1x128xf32> to vector<8x128xf32>
    %65 = arith.subf %59, %64 : vector<8x128xf32>
    %66 = arith.mulf %65, %65 : vector<8x128xf32>
    %cst_36 = arith.constant dense<0.000000e+00> : vector<128xf32>
    %67 = vector.multi_reduction <add>, %66, %cst_36 [0] : vector<8x128xf32> to vector<128xf32>
    %68 = vector.shape_cast %67 : vector<128xf32> to vector<1x128xf32>
    %cst_37 = arith.constant 8.000000e+00 : f32
    %69 = vector.broadcast %cst_37 : f32 to vector<1x128xf32>
    %70 = arith.divf %68, %69 : vector<1x128xf32>
    %cst_38 = arith.constant 9.99999974E-6 : f32
    %71 = vector.broadcast %cst_38 : f32 to vector<1x128xf32>
    %72 = arith.addf %70, %71 : vector<1x128xf32>
    %73 = math.rsqrt %72 : vector<1x128xf32>
    %74 = vector.broadcast %54 : vector<1x128xf32> to vector<8x128xf32>
    %75 = arith.mulf %74, %65 : vector<8x128xf32>
    %76 = vector.broadcast %73 : vector<1x128xf32> to vector<8x128xf32>
    %77 = arith.mulf %75, %76 : vector<8x128xf32>
    %78 = vector.broadcast %55 : vector<1x128xf32> to vector<8x128xf32>
    %79 = arith.addf %77, %78 : vector<8x128xf32>
    %80 = arith.truncf %79 : vector<8x128xf32> to vector<8x128xbf16>
    %c0_39 = arith.constant 0 : index
    %c0_40 = arith.constant 0 : index
    %81 = vector.load %arg12[%c0_39, %c0_40] : memref<128x128xbf16, #tpu.memory_space<vmem>>, vector<128x128xbf16>
    %cst_41 = arith.constant dense<0.000000e+00> : vector<8x128xf32>
    %82 = tpu.matmul %80, %81, %cst_41 {dimension_numbers = #tpu.dot_dimension_numbers<[1], [0], [0], [1], [0, 0, 1, 1], [], []>} : vector<8x128xbf16>, vector<128x128xbf16>, vector<8x128xf32> -> vector<8x128xf32>
    %c0_42 = arith.constant 0 : index
    %c0_43 = arith.constant 0 : index
    %83 = vector.load %arg13[%c0_42, %c0_43] : memref<1x128xf32, #tpu.memory_space<vmem>>, vector<1x128xf32>
    %84 = vector.broadcast %83 : vector<1x128xf32> to vector<8x128xf32>
    %85 = arith.addf %82, %84 : vector<8x128xf32>
    %86 = arith.negf %85 : vector<8x128xf32>
    %87 = math.exp %86 : vector<8x128xf32>
    %cst_44 = arith.constant 1.000000e+00 : f32
    %88 = vector.broadcast %cst_44 : f32 to vector<8x128xf32>
    %89 = arith.addf %88, %87 : vector<8x128xf32>
    %90 = arith.divf %88, %89 : vector<8x128xf32>
    %c0_45 = arith.constant 0 : index
    %c0_46 = arith.constant 0 : index
    %91 = vector.load %arg14[%c0_45, %c0_46] : memref<8x128xf32, #tpu.memory_space<vmem>>, vector<8x128xf32>
    tpu.vector_store %arg14[%c0_45, %c0_46], %90 {strides = array<i32>} : memref<8x128xf32, #tpu.memory_space<vmem>>, vector<8x128xf32>,
    return
  }
}

</mosaic_0001>

<bundles_post_ra>
// kernel: tpu_custom_call.1
= control target key start
LH: loop header
LB: loop body
LE: loop exit
PB: predicated region body
PF: predicated region fallthrough
CT: control target
= control target key end

     0   :  { %19 = vsyncpa [#allocation3], 0  ;;  %s1442_s0 = inlined_call_operand.vmem [shape: s32[8,1], index: 0, kind: input, shape index: {}]   ;;  %s1443_s1 = inlined_call_operand.vmem [shape: s32[8,1], index: 1, kind: input, shape index: {}]   ;;  %s1444_s2 = inlined_call_operand.hbm [shape: bf16[128,128], index: 2, kind: input, shape index: {}]   ;;  %s1445_s3 = inlined_call_operand.hbm [shape: bf16[128,128], index: 3, kind: input, shape index: {}]   ;;  %s1446_s4 = inlined_call_operand.hbm [shape: bf16[128,128], index: 4, kind: input, shape index: {}]   ;;  %s1447_s5 = inlined_call_operand.vmem [shape: f32[1,128], index: 5, kind: input, shape index: {}]   ;;  %s1448_s6 = inlined_call_operand.vmem [shape: f32[1,128], index: 6, kind: input, shape index: {}]   ;;  %s1449_s7 = inlined_call_operand.vmem [shape: f32[1,128], index: 7, kind: input, shape index: {}]   ;;  %s1450_s8 = inlined_call_operand.hbm [shape: bf16[128,128], index: 8, kind: input, shape index: {}]   ;;  %s1451_s9 = inlined_call_operand.vmem [shape: f32[1,128], index: 9, kind: input, shape index: {}]   ;;  %s1452_s10 = inlined_call_operand.vmem [shape: f32[1,128], index: 10, kind: input, shape index: {}]   ;;  %s1453_s11 = inlined_call_operand.vmem [shape: f32[1,128], index: 11, kind: input, shape index: {}]   ;;  %s1454_s12 = inlined_call_operand.hbm [shape: bf16[128,128], index: 12, kind: input, shape index: {}]   ;;  %s1455_s13 = inlined_call_operand.vmem [shape: f32[1,128], index: 13, kind: input, shape index: {}]   ;;  %s1456_s14 = inlined_call_operand.hbm [shape: f32[8,128], index: 14, kind: output, shape index: {}]  }
   0x1   :  { %20 = vsyncpa [#allocation6], 0 }
   0x2   :  { %21 = vsyncpa [#allocation9], 0 }
   0x3   :  { %22 = vsyncpa [#allocation4], 0  ;;  %s1235_s29 = smov [#allocation5]   ;;  %s1236_s15 = smov [#allocation8]  }
   0x4   :  { %s44_s30 = sshll.u32 %s1235_s29, 4  ;;  %s74_s16 = sshll.u32 %s1236_s15, 4  ;;  %s45_s30 = int_to_ptr.vmem [resolvable:$true] %s44_s30  ;;  %s75_s16 = int_to_ptr.vmem [resolvable:$true] %s74_s16 }
   0x5   :  { %s1115_s17 = scalar_lea.vmem %s45_s30, 1024  ;;  %p1120_p1 = scmp.lt.s32.totalorder %s45_s30, %s45_s30 }
   0x6   :  { %p1116_p0 = scmp.ne.s32.totalorder %s45_s30, %s1115_s17  ;;  %p1121_p2 = scmp.lt.s32.totalorder %s1115_s17, %s1115_s17 }
   0x8   :  { %p1122_p3 = por %p1121_p2, %p1120_p1 }
   0xa   :  { %p1123_p4 = pnand %p1122_p3, %p1116_p0 }
   0xc   :  { %1126 = shalt.err (!%p1123_p4)
}
   0xd   :  { %s1237_s18 = smov 64   ;;  %s1238_s19 = smov 4  }
   0xe   :  { %50 = dma.hbm_to_vmem [thread:$0]  %s1445_s3, 1024, %s45_s30, [#allocation6], %s1237_s18, %s1237_s18, %s1238_s19  }
   0xf   :  { %s1135_s22 = scalar_lea.vmem %s75_s16, 1024  ;;  %p1140_p6 = scmp.lt.s32.totalorder %s75_s16, %s75_s16 }
  0x10   :  { %p1136_p5 = scmp.ne.s32.totalorder %s75_s16, %s1135_s22  ;;  %p1141_p7 = scmp.lt.s32.totalorder %s1135_s22, %s1135_s22 }
  0x12   :  { %p1142_p8 = por %p1141_p7, %p1140_p6 }
  0x14   :  { %p1143_p9 = pnand %p1142_p8, %p1136_p5 }
  0x16   :  { %1146 = shalt.err (!%p1143_p9)
}
  0x17   :  { %80 = dma.hbm_to_vmem [thread:$0]  %s1450_s8, 1024, %s75_s16, [#allocation9], %s1237_s18, %s1237_s18, %s1238_s19  }
  0x18   :  { %s1239_s25 = smov [#allocation2]   ;;  %s1240_s27 = smov [#allocation7]  }
  0x19   :  { %s32_s26 = sshll.u32 %s1239_s25, 4  ;;  %s56_s28 = sshll.u32 %s1240_s27, 4  ;;  %s33_s26 = int_to_ptr.vmem [resolvable:$true] %s32_s26  ;;  %s57_s28 = int_to_ptr.vmem [resolvable:$true] %s56_s28 }
  0x1a   :  { %s1155_s3 = scalar_lea.vmem %s33_s26, 1024  ;;  %p1160_p11 = scmp.lt.s32.totalorder %s33_s26, %s33_s26 }
  0x1b   :  { %p1156_p10 = scmp.ne.s32.totalorder %s33_s26, %s1155_s3  ;;  %p1161_p12 = scmp.lt.s32.totalorder %s1155_s3, %s1155_s3 }
  0x1d   :  { %p1162_p13 = por %p1161_p12, %p1160_p11 }
  0x1f   :  { %p1163_p0 = pnand %p1162_p13, %p1156_p10 }
  0x21   :  { %1166 = shalt.err (!%p1163_p0)
}
  0x22   :  { %38 = dma.hbm_to_vmem [thread:$0]  %s1444_s2, 1024, %s33_s26, [#allocation3], %s1237_s18, %s1237_s18, %s1238_s19  }
  0x23   :  { %s1175_s8 = scalar_lea.vmem %s57_s28, 1024  ;;  %p1180_p2 = scmp.lt.s32.totalorder %s57_s28, %s57_s28 }
  0x24   :  { %p1176_p1 = scmp.ne.s32.totalorder %s57_s28, %s1175_s8  ;;  %p1181_p3 = scmp.lt.s32.totalorder %s1175_s8, %s1175_s8 }
  0x26   :  { %p1182_p4 = por %p1181_p3, %p1180_p2 }
  0x28   :  { %p1183_p5 = pnand %p1182_p4, %p1176_p1 }
  0x2a   :  { %1186 = shalt.err (!%p1183_p5)
}
  0x2b   :  { %62 = dma.hbm_to_vmem [thread:$0]  %s1446_s4, 1024, %s57_s28, [#allocation6], %s1237_s18, %s1237_s18, %s1238_s19  }
  0x2c   :  { %s1241_s17 = smov [#allocation10]  }
  0x2d   :  { %s92_s20 = sshll.u32 %s1241_s17, 4  ;;  %s93_s20 = int_to_ptr.vmem [resolvable:$true] %s92_s20 }
  0x2e   :  { %s1195_s21 = scalar_lea.vmem %s93_s20, 1024  ;;  %p1200_p7 = scmp.lt.s32.totalorder %s93_s20, %s93_s20 }
  0x2f   :  { %p1196_p6 = scmp.ne.s32.totalorder %s93_s20, %s1195_s21  ;;  %p1201_p8 = scmp.lt.s32.totalorder %s1195_s21, %s1195_s21 }
  0x31   :  { %p1202_p9 = por %p1201_p8, %p1200_p7 }
  0x33   :  { %p1203_p10 = pnand %p1202_p9, %p1196_p6 }
  0x35   :  { %1206 = shalt.err (!%p1203_p10)
}
  0x36   :  { %98 = dma.hbm_to_vmem [thread:$0]  %s1454_s12, 1024, %s93_s20, [#allocation9], %s1237_s18, %s1237_s18, %s1238_s19  }
  0x37   :  { %1227 = dma.done.wait [#allocation3], 1024  }
  0x38   :  { %1228 = vsyncadd [#allocation3], 4294966272 }
  0x39   :  { %1229 = dma.done.wait [#allocation6], 2048  }
  0x3a   :  { %1230 = vsyncadd [#allocation6], 4294965248 }
  0x3b   :  { %1231 = dma.done.wait [#allocation9], 2048  }
  0x3c   :  { %1232 = vsyncadd [#allocation9], 4294965248  ;;  %v1242_v0 = vmov 0   ;;  %v1243_v1 = vmov 0.0   ;;  %vm1244_vm0 = vmmov 0   ;;  %v135_v2 = vld [vmem:[%s1442_s0] sm:$0xff]  ;;  %v133_v12 = vlaneseq }
  0x3d   :  { %1058 = vset.pattern.permute.xlu0 %v1242_v0  ;;  %926 = vmatprep.subr.bf16.mxu0 %v1243_v1  ;;  %v1059_v3 = vld [vmem:[#allocation2 + $0x38] sm:$0xff]   ;;  %v143_v4 = vld [vmem:[%s1443_s1] sm:$0xff]  ;;  %v1060_v5 = vld [vmem:[#allocation2 + $0x30] sm:$0xff]   ;;  %v1245_v16 = vmov 1.0|1.0  }
  0x3e   :  { %946 = vmatprep.subr.bf16.mxu1 %v1243_v1  ;;  %942 = vmatprep.mubr.msk.bf16.mxu0 %vm1244_vm0, %v1243_v1  ;;  %v1061_v6 = vld [vmem:[#allocation2 + $0x28] sm:$0xff]   ;;  %v1062_v7 = vld [vmem:[#allocation2 + $0x20] sm:$0xff]   ;;  %v1063_v8 = vld [vmem:[#allocation2 + $0x18] sm:$0xff]   ;;  %v134_v13 = vand.u32 127, %v133_v12 }
  0x3f   :  { %962 = vmatprep.mubr.msk.bf16.mxu1 %vm1244_vm0, %v1243_v1  ;;  %137 = vperm.xlu0 %1058, %v135_v2   ;;  %v1064_v9 = vld [vmem:[#allocation2 + $0x10] sm:$0xff]   ;;  %v1065_v10 = vld [vmem:[#allocation2 + $0x8] sm:$0xff]   ;;  %v1066_v11 = vld [vmem:[#allocation2] sm:$0xff]  }
  0x40   :  { %927 = vmatpush3.bf16.msra.mxu0 %v1059_v3  ;;  %947 = vmatpush3.bf16.msra.mxu1 %v1059_v3  ;;  %v1068_v15 = vld [vmem:[#allocation7 + $0x38] sm:$0xff]   ;;  %v1070_v19 = vld [vmem:[#allocation7 + $0x30] sm:$0xff]   ;;  %v1072_v21 = vld [vmem:[#allocation7 + $0x28] sm:$0xff]  }
  0x41   :  { %928 = vmatprep.subr.bf16.mxu0 %v1243_v1  ;;  %948 = vmatprep.subr.bf16.mxu1 %v1243_v1  ;;  %v1067_v18 = vld [vmem:[#allocation5 + $0x38] sm:$0xff]   ;;  %v1069_v20 = vld [vmem:[#allocation5 + $0x30] sm:$0xff]   ;;  %v1071_v22 = vld [vmem:[#allocation5 + $0x28] sm:$0xff]  }
  0x42   :  { %v1074_v23 = vld [vmem:[#allocation7 + $0x20] sm:$0xff]   ;;  %v1076_v25 = vld [vmem:[#allocation7 + $0x18] sm:$0xff]   ;;  %v1078_v27 = vld [vmem:[#allocation7 + $0x10] sm:$0xff]  }
  0x43   :  { %145 = vperm.xlu0 %1058, %v143_v4   ;;  %v1073_v24 = vld [vmem:[#allocation5 + $0x20] sm:$0xff]   ;;  %v1075_v26 = vld [vmem:[#allocation5 + $0x18] sm:$0xff]   ;;  %v1077_v28 = vld [vmem:[#allocation5 + $0x10] sm:$0xff]  }
  0x44   :  { %929 = vmatpush3.bf16.msra.mxu0 %v1060_v5  ;;  %949 = vmatpush3.bf16.msra.mxu1 %v1060_v5  ;;  %v1079_v29 = vld [vmem:[#allocation5 + $0x8] sm:$0xff]   ;;  %v1081_v31 = vld [vmem:[#allocation5] sm:$0xff]   ;;  %v1083_v43 = vld [vmem:[#allocation8 + $0x38] sm:$0xff]  }
  0x45   :  { %930 = vmatprep.subr.bf16.mxu0 %v1243_v1  ;;  %950 = vmatprep.subr.bf16.mxu1 %v1243_v1  ;;  %v1080_v30 = vld [vmem:[#allocation7 + $0x8] sm:$0xff]   ;;  %v1082_v32 = vld [vmem:[#allocation7] sm:$0xff]   ;;  %v1084_v44 = vld [vmem:[#allocation8 + $0x30] sm:$0xff]  }
  0x46   :  { %v1085_v45 = vld [vmem:[#allocation8 + $0x28] sm:$0xff]   ;;  %v1086_v46 = vld [vmem:[#allocation8 + $0x20] sm:$0xff]   ;;  %v1087_v47 = vld [vmem:[#allocation8 + $0x18] sm:$0xff]  }
  0x47   :  { %v1088_v48 = vld [vmem:[#allocation8 + $0x10] sm:$0xff]   ;;  %v1089_v49 = vld [vmem:[#allocation8 + $0x8] sm:$0xff]   ;;  %v1090_v50 = vld [vmem:[#allocation8] sm:$0xff]  }
  0x48   :  { %931 = vmatpush3.bf16.msra.mxu0 %v1061_v6  ;;  %951 = vmatpush3.bf16.msra.mxu1 %v1061_v6  ;;  %v848_v54 = vld [vmem:[%s1447_s5] ss:$0 sm:$0xff] }
  0x49   :  { %932 = vmatprep.subr.bf16.mxu0 %v1243_v1  ;;  %952 = vmatprep.subr.bf16.mxu1 %v1243_v1 }
  0x4c   :  { %933 = vmatpush3.bf16.msra.mxu0 %v1062_v7  ;;  %953 = vmatpush3.bf16.msra.mxu1 %v1062_v7 }
  0x4d   :  { %934 = vmatprep.subr.bf16.mxu0 %v1243_v1  ;;  %954 = vmatprep.subr.bf16.mxu1 %v1243_v1 }
  0x50   :  { %935 = vmatpush3.bf16.msra.mxu0 %v1063_v8  ;;  %955 = vmatpush3.bf16.msra.mxu1 %v1063_v8 }
  0x51   :  { %936 = vmatprep.subr.bf16.mxu0 %v1243_v1  ;;  %956 = vmatprep.subr.bf16.mxu1 %v1243_v1 }
  0x54   :  { %937 = vmatpush3.bf16.msra.mxu0 %v1064_v9  ;;  %957 = vmatpush3.bf16.msra.mxu1 %v1064_v9 }
  0x55   :  { %938 = vmatprep.subr.bf16.mxu0 %v1243_v1  ;;  %958 = vmatprep.subr.bf16.mxu1 %v1243_v1 }
  0x58   :  { %939 = vmatpush3.bf16.msra.mxu0 %v1065_v10  ;;  %959 = vmatpush3.bf16.msra.mxu1 %v1065_v10 }
  0x59   :  { %940 = vmatprep.subr.bf16.mxu0 %v1243_v1  ;;  %960 = vmatprep.subr.bf16.mxu1 %v1243_v1 }
  0x5c   :  { %941 = vmatpush3.bf16.msra.mxu0 %v1066_v11  ;;  %961 = vmatpush3.bf16.msra.mxu1 %v1066_v11 }
  0x5d   :  { %986 = vmatprep.subr.bf16.mxu1 %v1243_v1  ;;  %966 = vmatprep.subr.bf16.mxu0 %v1243_v1 }
  0xba   :  { %v138_v14 = vpop.permute.xlu0 %137 }
  0xbb   :  { %vm139_vm1 = vcmp.eq.s32.totalorder %v134_v13, %v138_v14 }
  0xbc   :  { %vm828_vm2 = vmpackc.low %vm139_vm1, %vm139_vm1 }
  0xbd   :  { %943 = vmatmul.mubr.msk.bf16.vlgmr.msra.gmra.mxu0 %vm828_vm2, %v1245_v16 }
  0xbe   :  { %v146_v17 = vpop.permute.xlu0 %145  ;;  %967 = vmatpush3.bf16.msra.mxu0 %v1068_v15  ;;  %982 = vmatprep.mubr.msk.bf16.mxu0 %vm1244_vm0, %v1243_v1 }
  0xbf   :  { %vm147_vm3 = vcmp.eq.s32.totalorder %v134_v13, %v146_v17  ;;  %968 = vmatprep.subr.bf16.mxu0 %v1243_v1  ;;  %v849_v17 = vld [vmem:[%s1448_s6] ss:$0 sm:$0xff] }
  0xc0   :  { %vm830_vm4 = vmpackc.low %vm147_vm3, %vm147_vm3 }
  0xc1   :  { %963 = vmatmul.mubr.msk.bf16.vlgmr.msra.gmra.mxu1 %vm830_vm4, %v1245_v16 }
  0xc2   :  { %987 = vmatpush3.bf16.msra.mxu1 %v1067_v18  ;;  %969 = vmatpush3.bf16.msra.mxu0 %v1070_v19 }
  0xc3   :  { %988 = vmatprep.subr.bf16.mxu1 %v1243_v1  ;;  %970 = vmatprep.subr.bf16.mxu0 %v1243_v1 }
  0xc4   :  { %1002 = vmatprep.mubr.msk.bf16.mxu1 %vm1244_vm0, %v1243_v1 }
  0xc6   :  { %989 = vmatpush3.bf16.msra.mxu1 %v1069_v20  ;;  %971 = vmatpush3.bf16.msra.mxu0 %v1072_v21  ;;  %v850_v20 = vld [vmem:[%s1449_s7] ss:$0 sm:$0xff] }
  0xc7   :  { %990 = vmatprep.subr.bf16.mxu1 %v1243_v1  ;;  %972 = vmatprep.subr.bf16.mxu0 %v1243_v1 }
  0xca   :  { %991 = vmatpush3.bf16.msra.mxu1 %v1071_v22  ;;  %973 = vmatpush3.bf16.msra.mxu0 %v1074_v23 }
  0xcb   :  { %992 = vmatprep.subr.bf16.mxu1 %v1243_v1  ;;  %974 = vmatprep.subr.bf16.mxu0 %v1243_v1 }
  0xce   :  { %993 = vmatpush3.bf16.msra.mxu1 %v1073_v24  ;;  %975 = vmatpush3.bf16.msra.mxu0 %v1076_v25  ;;  %v1091_v24 = vld [vmem:[#allocation10 + $0x38] sm:$0xff]   ;;  %v1092_v25 = vld [vmem:[#allocation10 + $0x30] sm:$0xff]  }
  0xcf   :  { %994 = vmatprep.subr.bf16.mxu1 %v1243_v1  ;;  %976 = vmatprep.subr.bf16.mxu0 %v1243_v1 }
  0xd2   :  { %995 = vmatpush3.bf16.msra.mxu1 %v1075_v26  ;;  %977 = vmatpush3.bf16.msra.mxu0 %v1078_v27  ;;  %v1093_v26 = vld [vmem:[#allocation10 + $0x28] sm:$0xff]   ;;  %v1094_v27 = vld [vmem:[#allocation10 + $0x20] sm:$0xff]  }
  0xd3   :  { %996 = vmatprep.subr.bf16.mxu1 %v1243_v1  ;;  %978 = vmatprep.subr.bf16.mxu0 %v1243_v1 }
  0xd6   :  { %997 = vmatpush3.bf16.msra.mxu1 %v1077_v28  ;;  %979 = vmatpush3.bf16.msra.mxu0 %v1080_v30  ;;  %v1095_v28 = vld [vmem:[#allocation10 + $0x18] sm:$0xff]   ;;  %v1097_v30 = vld [vmem:[#allocation10 + $0x8] sm:$0xff]  }
  0xd7   :  { %998 = vmatprep.subr.bf16.mxu1 %v1243_v1  ;;  %980 = vmatprep.subr.bf16.mxu0 %v1243_v1 }
  0xda   :  { %999 = vmatpush3.bf16.msra.mxu1 %v1079_v29  ;;  %981 = vmatpush3.bf16.msra.mxu0 %v1082_v32  ;;  %v1096_v29 = vld [vmem:[#allocation10 + $0x10] sm:$0xff]   ;;  %v851_v32 = vld [vmem:[%s1451_s9] ss:$0 sm:$0xff] }
  0xdb   :  { %1000 = vmatprep.subr.bf16.mxu1 %v1243_v1  ;;  %1006 = vmatprep.subr.bf16.mxu0 %v1243_v1 }
  0xde   :  { %1001 = vmatpush3.bf16.msra.mxu1 %v1081_v31  ;;  %v1098_v31 = vld [vmem:[#allocation10] sm:$0xff]  }
  0xdf   :  { %1026 = vmatprep.subr.bf16.mxu1 %v1243_v1 }
 0x17d   :  { %v233_v33 = vpop.f32.mrf.mxu0 }
 0x17e   :  { %v239_v34 = vpack.c.bf16 %v233_v33, %v233_v33 }
 0x17f   :  { %v944_v35 = vpop.f32.mrf.mxu0 }
 0x180   :  { %1003 = vmatmul.mubr.bf16.vlgmr.msra.gmra.mxu1 %v239_v34 }
 0x181   :  { %v236_v36 = vpop.f32.mrf.mxu0  ;;  %v274_v37 = vpop.f32.mrf.mxu1  ;;  %1042 = vmatprep.mubr.msk.bf16.mxu1 %vm1244_vm0, %v1243_v1  ;;  %1027 = vmatpush3.bf16.msra.mxu1 %v1091_v24 }
 0x182   :  { %v280_v38 = vpack.c.bf16 %v274_v37, %v274_v37  ;;  %1028 = vmatprep.subr.bf16.mxu1 %v1243_v1 }
 0x183   :  { %v945_v39 = vpop.f32.mrf.mxu0  ;;  %v964_v40 = vpop.f32.mrf.mxu1 }
 0x184   :  { %983 = vmatmul.mubr.bf16.vlgmr.msra.gmra.mxu0 %v280_v38 }
 0x185   :  { %v277_v41 = vpop.f32.mrf.mxu1  ;;  %1022 = vmatprep.mubr.msk.bf16.mxu0 %vm1244_vm0, %v1243_v1  ;;  %1007 = vmatpush3.bf16.msra.mxu0 %v1083_v43 }
 0x186   :  { %1008 = vmatprep.subr.bf16.mxu0 %v1243_v1  ;;  %1029 = vmatpush3.bf16.msra.mxu1 %v1092_v25 }
 0x187   :  { %v965_v42 = vpop.f32.mrf.mxu1  ;;  %1030 = vmatprep.subr.bf16.mxu1 %v1243_v1 }
 0x189   :  { %1009 = vmatpush3.bf16.msra.mxu0 %v1084_v44 }
 0x18a   :  { %1010 = vmatprep.subr.bf16.mxu0 %v1243_v1  ;;  %1031 = vmatpush3.bf16.msra.mxu1 %v1093_v26 }
 0x18b   :  { %1032 = vmatprep.subr.bf16.mxu1 %v1243_v1 }
 0x18d   :  { %1011 = vmatpush3.bf16.msra.mxu0 %v1085_v45 }
 0x18e   :  { %1012 = vmatprep.subr.bf16.mxu0 %v1243_v1  ;;  %1033 = vmatpush3.bf16.msra.mxu1 %v1094_v27 }
 0x18f   :  { %1034 = vmatprep.subr.bf16.mxu1 %v1243_v1 }
 0x191   :  { %1013 = vmatpush3.bf16.msra.mxu0 %v1086_v46 }
 0x192   :  { %1014 = vmatprep.subr.bf16.mxu0 %v1243_v1  ;;  %1035 = vmatpush3.bf16.msra.mxu1 %v1095_v28 }
 0x193   :  { %1036 = vmatprep.subr.bf16.mxu1 %v1243_v1 }
 0x195   :  { %1015 = vmatpush3.bf16.msra.mxu0 %v1087_v47 }
 0x196   :  { %1016 = vmatprep.subr.bf16.mxu0 %v1243_v1  ;;  %1037 = vmatpush3.bf16.msra.mxu1 %v1096_v29 }
 0x197   :  { %1038 = vmatprep.subr.bf16.mxu1 %v1243_v1 }
 0x199   :  { %1017 = vmatpush3.bf16.msra.mxu0 %v1088_v48 }
 0x19a   :  { %1018 = vmatprep.subr.bf16.mxu0 %v1243_v1  ;;  %1039 = vmatpush3.bf16.msra.mxu1 %v1097_v30 }
 0x19b   :  { %1040 = vmatprep.subr.bf16.mxu1 %v1243_v1 }
 0x19d   :  { %1019 = vmatpush3.bf16.msra.mxu0 %v1089_v49 }
 0x19e   :  { %1020 = vmatprep.subr.bf16.mxu0 %v1243_v1  ;;  %1041 = vmatpush3.bf16.msra.mxu1 %v1098_v31 }
 0x1a1   :  { %1021 = vmatpush3.bf16.msra.mxu0 %v1090_v50 }
 0x240   :  { %v483_v51 = vpop.f32.mrf.mxu1 }
 0x242   :  { %v1004_v52 = vpop.f32.mrf.mxu1 }
 0x244   :  { %v395_v53 = vpop.f32.mrf.mxu0  ;;  %v486_v55 = vpop.f32.mrf.mxu1 }
 0x245   :  { %v484_v56 = vadd.f32 %v483_v51, %v395_v53  ;;  %v860_v55 = vld [vmem:[%s1452_s10] ss:$0 sm:$0xff]  ;;  %s1246_s10 = smov [#allocation11]  }
 0x246   :  { %v984_v57 = vpop.f32.mrf.mxu0  ;;  %v1005_v58 = vpop.f32.mrf.mxu1 }
 0x247   :  { %v498_v59 = vadd.f32 %v848_v54, %v484_v56  ;;  %v861_v58 = vld [vmem:[%s1453_s11] ss:$0 sm:$0xff]  ;;  %s807_s11 = sshll.u32 %s1246_s10, 4  ;;  %s808_s11 = int_to_ptr.vmem [resolvable:$true] %s807_s11 }
 0x248   :  { %v398_v60 = vpop.f32.mrf.mxu0  ;;  %s1207_s30 = scalar_lea.vmem %s808_s11, 128  ;;  %p1212_p12 = scmp.lt.s32.totalorder %s808_s11, %s808_s11 }
 0x249   :  { %v499_v61 = vmax.f32 %v498_v59, 0.0  ;;  %p1208_p11 = scmp.ne.s32.totalorder %s808_s11, %s1207_s30  ;;  %p1213_p13 = scmp.lt.s32.totalorder %s1207_s30, %s1207_s30 }
 0x24a   :  { %v985_v62 = vpop.f32.mrf.mxu0 }
 0x24b   :  { %v500_v63 = vrot.slane %v499_v61, 4  ;;  %v862_v62 = vld [vmem:[%s1455_s13] ss:$0 sm:$0xff]  ;;  %p1214_p0 = por %p1213_p13, %p1212_p12 }
 0x24d   :  { %v501_v0 = vadd.f32 %v500_v63, %v499_v61  ;;  %p1215_p1 = pnand %p1214_p0, %p1208_p11 }
 0x24f   :  { %v502_v2 = vrot.slane %v501_v0, 2 }
 0x251   :  { %v503_v3 = vadd.f32 %v502_v2, %v501_v0 }
 0x253   :  { %v504_v4 = vrot.slane %v503_v3, 1 }
 0x255   :  { %v505_v5 = vadd.f32 %v504_v4, %v503_v3 }
 0x257   :  { %v507_v6 = vmul.f32 0.125, %v505_v5 }
 0x259   :  { %v508_v7 = vsub.f32 %v499_v61, %v507_v6 }
 0x25b   :  { %v509_v8 = vmul.f32 %v508_v7, %v508_v7  ;;  %v525_v18 = vmul.f32 %v849_v17, %v508_v7 }
 0x25d   :  { %v510_v9 = vrot.slane %v509_v8, 4 }
 0x25f   :  { %v511_v10 = vadd.f32 %v510_v9, %v509_v8 }
 0x261   :  { %v512_v11 = vrot.slane %v511_v10, 2 }
 0x263   :  { %v513_v12 = vadd.f32 %v512_v11, %v511_v10 }
 0x265   :  { %v514_v13 = vrot.slane %v513_v12, 1 }
 0x267   :  { %v515_v14 = vadd.f32 %v514_v13, %v513_v12 }
 0x269   :  { %v516_v15 = vmul.f32 0.125, %v515_v14 }
 0x26b   :  { %v517_v16 = vadd.f32 1e-05, %v516_v15 }
 0x26d   :  { %1099 = vrsqrt.f32 %v517_v16 }
 0x27a   :  { %v1100_v19 = vpop.eup %1099 }
 0x27b   :  { %v526_v21 = vmul.f32 %v1100_v19, %v525_v18 }
 0x27d   :  { %v533_v22 = vadd.f32 %v850_v20, %v526_v21 }
 0x27f   :  { %v534_v23 = vpack.c.bf16 %v533_v22, %v533_v22 }
 0x281   :  { %1023 = vmatmul.mubr.bf16.vlgmr.msra.gmra.mxu0 %v534_v23 }
 0x341   :  { %v642_v33 = vpop.f32.mrf.mxu0 }
 0x342   :  { %v643_v34 = vadd.f32 %v851_v32, %v642_v33 }
 0x343   :  { %v1024_v35 = vpop.f32.mrf.mxu0 }
 0x344   :  { %v648_v36 = vmax.f32 %v643_v34, 0.0 }
 0x345   :  { %v645_v37 = vpop.f32.mrf.mxu0 }
 0x346   :  { %v649_v38 = vrot.slane %v648_v36, 4 }
 0x347   :  { %v1025_v39 = vpop.f32.mrf.mxu0 }
 0x348   :  { %v650_v40 = vadd.f32 %v649_v38, %v648_v36 }
 0x34a   :  { %v651_v41 = vrot.slane %v650_v40, 2 }
 0x34c   :  { %v652_v42 = vadd.f32 %v651_v41, %v650_v40 }
 0x34e   :  { %v653_v43 = vrot.slane %v652_v42, 1 }
 0x350   :  { %v654_v44 = vadd.f32 %v653_v43, %v652_v42 }
 0x352   :  { %v655_v45 = vmul.f32 0.125, %v654_v44 }
 0x354   :  { %v656_v1 = vsub.f32 %v648_v36, %v655_v45 }
 0x356   :  { %v657_v46 = vmul.f32 %v656_v1, %v656_v1  ;;  %v673_v56 = vmul.f32 %v860_v55, %v656_v1 }
 0x358   :  { %v658_v47 = vrot.slane %v657_v46, 4 }
 0x35a   :  { %v659_v48 = vadd.f32 %v658_v47, %v657_v46 }
 0x35c   :  { %v660_v49 = vrot.slane %v659_v48, 2 }
 0x35e   :  { %v661_v50 = vadd.f32 %v660_v49, %v659_v48 }
 0x360   :  { %v662_v51 = vrot.slane %v661_v50, 1 }
 0x362   :  { %v663_v52 = vadd.f32 %v662_v51, %v661_v50 }
 0x364   :  { %v664_v53 = vmul.f32 0.125, %v663_v52 }
 0x366   :  { %v665_v54 = vadd.f32 1e-05, %v664_v53 }
 0x368   :  { %1101 = vrsqrt.f32 %v665_v54 }
 0x375   :  { %v1102_v57 = vpop.eup %1101 }
 0x376   :  { %v674_v59 = vmul.f32 %v1102_v57, %v673_v56 }
 0x378   :  { %v681_v60 = vadd.f32 %v861_v58, %v674_v59 }
 0x37a   :  { %v682_v61 = vpack.c.bf16 %v681_v60, %v681_v60 }
 0x37c   :  { %1043 = vmatmul.mubr.bf16.vlgmr.msra.gmra.mxu1 %v682_v61 }
 0x43c   :  { %v788_v63 = vpop.f32.mrf.mxu1 }
 0x43d   :  { %v789_v0 = vadd.f32 %v862_v62, %v788_v63 }
 0x43e   :  { %v1044_v2 = vpop.f32.mrf.mxu1 }
 0x43f   :  { %v871_v3 = vmul.f32 -1.442695, %v789_v0 }
 0x440   :  { %v791_v4 = vpop.f32.mrf.mxu1 }
 0x441   :  { %1103 = vpow2.f32 %v871_v3 }
 0x442   :  { %v1045_v5 = vpop.f32.mrf.mxu1 }
 0x44e   :  { %v1104_v6 = vpop.eup %1103 }
 0x44f   :  { %v797_v7 = vadd.f32 1.0, %v1104_v6 }
 0x451   :  { %1105 = vrcp.f32 %v797_v7 }
 0x45e   :  { %v1106_v8 = vpop.eup %1105 }
 0x45f   :  { %800 = vst [vmem:[#allocation11] sm:$0xff] %v1106_v8 }
 0x460   :  { %1218 = shalt.err (!%p1215_p1)
}
 0x461   :  { %810 = dma.vmem_to_hbm [thread:$0]  %s808_s11, 128, %s1456_s14, [#allocation4]  }
 0x462   :  { %1233 = dma.done.wait [#allocation4], 128  }
 0x463   :  { %1234 = vsyncadd [#allocation4], 4294967168 }
 0x464   :  { %814 = vsyncpa [#allocation3], 1 }
 0x465   :  { %815 = vsyncpa [#allocation6], 1 }
 0x466   :  { %816 = vsyncpa [#allocation9], 1 }
 0x467   :  { %817 = vsyncpa [#allocation4], 1 }

</bundles_post_ra>
